<compile_context>
chip_gen: v7x
topology: tpu7x:2x2x1
jax: 0.10.0
libtpu: 0.0.40
codegen_flags: <defaults>
</compile_context>

<pallas_src>
import functools

import numpy as np
import jax
import jax.numpy as jnp
from jax.experimental import pallas as pl
from jax.experimental.pallas import tpu as pltpu


def _lcm_kernel(bR_ref, bI_ref, t_ref, aR_ref, sR_ref, lR_ref, coef_ref, w_ref,
                out_ref, v_scr, *, max_shift_hz, min_lw_hz, lw_range_hz, n_points):
    # ---- build the fused RHS vector v = [vR | vI | baseline coeffs] ONCE ----
    # v_scr persists across grid steps (dimension_semantics=("arbitrary",) guarantees the
    # sequential single-core sweep this hoist relies on).
    @pl.when(pl.program_id(0) == 0)
    def _():
        # constrained parameter transforms on (MPAD, 1) single-vreg columns
        a_raw = aR_ref[...]                                                       # (MPAD, 1)
        amplitudes = jnp.maximum(a_raw, 0.0) + jnp.log1p(jnp.exp(-jnp.abs(a_raw)))  # stable softplus
        shifts_hz = jnp.tanh(sR_ref[...]) * max_shift_hz                          # (MPAD, 1)
        linewidths_hz = min_lw_hz + lw_range_hz / (1.0 + jnp.exp(-lR_ref[...]))   # min + sigmoid*range

        t = t_ref[...]                                                            # (1, N) lane-dense
        pi = jnp.float32(np.pi)

        # Lorentzian broadening + frequency shift in the time domain on dense (MPAD, N) planes.
        decay = jnp.exp((-pi * linewidths_hz) * t)                                # (MPAD, N)  EUP
        phase = (2.0 * pi) * shifts_hz * t                                        # (MPAD, N)
        c = jnp.cos(phase)                                                        # VALU poly expansion
        s = jnp.sin(phase)
        bR = bR_ref[...]                                                          # (MPAD, N) real(basis_time)
        bI = bI_ref[...]                                                          # (MPAD, N) imag(basis_time)

        # amplitude folded in before the sublane reduction; padded bR/bI rows are exactly zero.
        wgt = amplitudes * decay                                                  # (MPAD, N)
        vR = jnp.sum(wgt * (bR * c - bI * s), axis=0, keepdims=True)              # (1, N)
        vI = jnp.sum(wgt * (bR * s + bI * c), axis=0, keepdims=True)              # (1, N)

        N = n_points
        v_scr[:, 0:N] = vR.astype(jnp.bfloat16)
        v_scr[:, N:2 * N] = vI.astype(jnp.bfloat16)
        v_scr[:, 2 * N:] = coef_ref[...].astype(jnp.bfloat16)                     # (1, NCP) padded coeffs

    # ---- ONE MXU call per output tile: real(fftshift(DFT)) + polynomial baseline ----
    # Wcat tile is (2N + NCP, col_tile) bf16; accumulate in f32.
    out_ref[...] = jnp.dot(v_scr[...], w_ref[...],
                           preferred_element_type=jnp.float32)                    # (1, col_tile)


def lcm_forward_pallas(bR, bI, t, Wcat, amp_raw, shift_raw, lw_raw, coef_row,
                       max_shift_hz, min_lw_hz, lw_range_hz, *, col_tile=None):
    MPAD, N = bR.shape
    K, Nw = Wcat.shape
    NCP = coef_row.shape[1]
    assert Nw == N and K == 2 * N + NCP

    # Pick col_tile: fold the grid away (grid=(1,)) whenever the full Wcat block is small
    # (shipped N=256 -> 264 KiB, trivially fits); otherwise tile at 256 (MXU-native width on
    # v6e/v7x, still fine on v5e) so the Wcat block never threatens VMEM at large N.
    if col_tile is None:
        full_wcat_bytes = K * N * 2                      # bf16
        col_tile = N if full_wcat_bytes <= (4 << 20) else 256
    assert N % col_tile == 0 and col_tile % 128 == 0
    grid = (N // col_tile,)

    kernel = functools.partial(
        _lcm_kernel,
        max_shift_hz=float(max_shift_hz),
        min_lw_hz=float(min_lw_hz),
        lw_range_hz=float(lw_range_hz),
        n_points=int(N),
    )

    # Explicit VMEM budget: double-buffered Wcat tile + basis planes + small scratch, with headroom.
    vmem_est = (2 * K * col_tile * 2          # Wcat tiles (bf16, double-buffered)
                + 2 * 2 * MPAD * N * 4        # bR, bI (f32, double-buffered by BlockSpec)
                + K * 2                       # v_scr (bf16)
                + 2 * col_tile * 4            # output tile (f32, double-buffered)
                + 64 * 1024)                  # params / time row / slack
    vmem_limit = int(min(max(2 * vmem_est, 4 << 20), 96 << 20))

    cost = pl.CostEstimate(
        flops=2 * K * N + 14 * MPAD * N,                    # fused matvec + elementwise planes
        transcendentals=3 * MPAD * N + 2 * MPAD,            # exp / cos / sin (+ param transforms)
        bytes_accessed=K * N * 2 + 2 * MPAD * N * 4 + N * 4 + N * 4 + 4 * MPAD * 4,
    )

    out = pl.pallas_call(
        kernel,
        out_shape=jax.ShapeDtypeStruct((1, N), jnp.float32),
        grid=grid,
        in_specs=[
            pl.BlockSpec((MPAD, N), lambda j: (0, 0)),          # basis real  (f32, lane-dense)
            pl.BlockSpec((MPAD, N), lambda j: (0, 0)),          # basis imag
            pl.BlockSpec((1, N), lambda j: (0, 0)),             # time axis row
            pl.BlockSpec((MPAD, 1), lambda j: (0, 0)),          # raw amplitudes
            pl.BlockSpec((MPAD, 1), lambda j: (0, 0)),          # raw shifts
            pl.BlockSpec((MPAD, 1), lambda j: (0, 0)),          # raw linewidths
            pl.BlockSpec((1, NCP), lambda j: (0, 0)),           # padded baseline coeff row
            pl.BlockSpec((K, col_tile), lambda j: (0, j)),      # fused [WR^T; -WI^T; poly^T], bf16
        ],
        out_specs=pl.BlockSpec((1, col_tile), lambda j: (0, j)),
        scratch_shapes=[pltpu.VMEM((1, K), jnp.bfloat16)],      # persistent fused RHS row
        compiler_params=pltpu.CompilerParams(
            # "arbitrary" (sequential) is REQUIRED: the pl.when(j==0) hoist writes v_scr once and
            # later grid steps reuse it; a "parallel" split would leave it uninitialized on core 1.
            dimension_semantics=("arbitrary",),
            vmem_limit_bytes=vmem_limit,
        ),
        cost_estimate=cost,
    )(bR, bI, t, amp_raw, shift_raw, lw_raw, coef_row, Wcat)
    return out[0, :]


def forward_reference(basis_freq, t1d, poly, amp_raw, shift_raw, lw_raw, coefs,
                      max_shift_hz, min_lw_hz, lw_range_hz):
    """Pure-JAX reference mirroring the torch forward (uses real FFTs, f32/c64)."""
    amplitudes = jax.nn.softplus(amp_raw)
    shifts = jnp.tanh(shift_raw) * max_shift_hz
    lws = min_lw_hz + jax.nn.sigmoid(lw_raw) * lw_range_hz
    bt = jnp.fft.ifft(jnp.fft.ifftshift(basis_freq, axes=0), axis=0)
    te = t1d[:, None]
    decay = jnp.exp(-te * jnp.pi * lws[None, :])
    ramp = jnp.exp(1j * 2.0 * jnp.pi * shifts[None, :] * te)
    mod = bt * decay * ramp
    freq = jnp.fft.fftshift(jnp.fft.fft(mod, axis=0), axes=0)
    spec = freq @ amplitudes.astype(freq.dtype)
    spec = spec + (poly @ coefs).astype(spec.dtype)
    return jnp.real(spec)


if __name__ == "__main__":
    # --- model configuration (small, consistent with the module) ---
    N = 256          # num_points
    M = 4            # num_metabolites
    MPAD = 8         # metabolite axis padded to a full sublane tile
    DEG = 2          # baseline_degree -> 3 coefficients
    NCP = 16         # baseline coeff rows padded (keeps bf16 Wcat sublane-tiling clean)
    dt = 5e-4        # dwell time [s]

    # constraints (module defaults)
    max_shift_hz = 5.0
    min_lw_hz = 0.1
    max_lw_hz = 10.0
    lw_range_hz = max_lw_hz - min_lw_hz

    # --- deterministic synthetic basis spectra (frequency domain, complex) ---
    key = jax.random.PRNGKey(0)
    k1, k2 = jax.random.split(key)
    basis_freq = (jax.random.normal(k1, (N, M), jnp.float32)
                  + 1j * jax.random.normal(k2, (N, M), jnp.float32)).astype(jnp.complex64)

    # --- desired constrained initial params -> inverse transforms -> raw params (as in __init__) ---
    amps0 = np.array([1.0, 0.8, 1.2, 0.5], np.float32)
    shifts0 = np.array([0.5, -1.0, 0.0, 2.0], np.float32)
    lws0 = np.array([2.0, 3.0, 1.5, 4.0], np.float32)
    bl0 = np.array([0.1, -0.05, 0.02], np.float32)

    amp_raw_np = np.log(np.expm1(np.maximum(amps0, 1e-6))).astype(np.float32)
    shift_raw_np = np.arctanh(np.clip(shifts0 / max_shift_hz, -0.99999, 0.99999)).astype(np.float32)
    norm_lw = np.clip((lws0 - min_lw_hz) / lw_range_hz, 1e-7, 1.0 - 1e-7)
    lw_raw_np = np.log(norm_lw / (1.0 - norm_lw)).astype(np.float32)

    # --- parameter-independent buffers (glue) ---
    t_np = (np.arange(N) * dt).astype(np.float32)
    n_idx = np.arange(N)
    W = np.exp(-2j * np.pi * np.outer(n_idx, n_idx) / N)          # DFT matrix
    W_shift = np.fft.fftshift(W, axes=0)                          # fftshift on output rows
    freq_norm = np.linspace(-1.0, 1.0, N).astype(np.float32)
    poly_np = np.stack([freq_norm ** d for d in range(DEG + 1)], axis=1).astype(np.float32)  # (N, DEG+1)
    poly_pad = np.zeros((N, NCP), np.float32)
    poly_pad[:, :DEG + 1] = poly_np

    # fused, transposed operator: out_row = [vR | vI | coefs] @ [WR^T; -WI^T; poly^T]
    Wcat_np = np.concatenate(
        [np.ascontiguousarray(W_shift.real.T),
         -np.ascontiguousarray(W_shift.imag.T),
         poly_pad.T], axis=0).astype(np.float32)                  # (2N + NCP, N)

    # time-domain basis (parameter-independent; matches ifft(ifftshift(basis_freq))), transposed to (M, N)
    basis_time = jnp.fft.ifft(jnp.fft.ifftshift(basis_freq, axes=0), axis=0)
    bR = jnp.zeros((MPAD, N), jnp.float32).at[:M].set(jnp.real(basis_time).astype(jnp.float32).T)
    bI = jnp.zeros((MPAD, N), jnp.float32).at[:M].set(jnp.imag(basis_time).astype(jnp.float32).T)
    # Invariant: padded metabolite rows must be exactly zero (softplus(0)=log 2 would otherwise
    # inject spurious amplitude through the sublane reduction).
    assert not np.any(np.asarray(bR[M:])) and not np.any(np.asarray(bI[M:]))

    # --- device arrays for the kernel (lane-dense layout) ---
    t = jnp.asarray(t_np).reshape(1, N)
    Wcat = jnp.asarray(Wcat_np, dtype=jnp.bfloat16)               # bf16 MXU operand, f32 accumulation
    amp_raw = jnp.zeros((MPAD, 1), jnp.float32).at[:M, 0].set(jnp.asarray(amp_raw_np))
    shift_raw = jnp.zeros((MPAD, 1), jnp.float32).at[:M, 0].set(jnp.asarray(shift_raw_np))
    lw_raw = jnp.zeros((MPAD, 1), jnp.float32).at[:M, 0].set(jnp.asarray(lw_raw_np))
    coef_row = jnp.zeros((1, NCP), jnp.float32).at[0, :DEG + 1].set(jnp.asarray(bl0))

    # --- run the Pallas kernel (full real model spectrum); col_tile=None -> full-N tile, grid=(1,) ---
    full_spec_out = lcm_forward_pallas(bR, bI, t, Wcat, amp_raw, shift_raw, lw_raw, coef_row,
                                       max_shift_hz, min_lw_hz, lw_range_hz, col_tile=None)

    # fitting_mask (default: all True) is a static buffer -> apply boolean gather outside the kernel
    # TODO(synk): boolean-mask gather with data-dependent output size has no static-shape Pallas equivalent.
    mask = np.ones(N, dtype=bool)
    masked_out = full_spec_out[np.nonzero(mask)[0]]
    masked_out = jax.block_until_ready(masked_out)

    # --- correctness check vs. pure-JAX FFT reference ---
    # (tolerance slightly looser than pure-f32 because the fused DFT matmul runs on the MXU in bf16)
    ref_full = forward_reference(basis_freq, jnp.asarray(t_np), jnp.asarray(poly_np),
                                 jnp.asarray(amp_raw_np), jnp.asarray(shift_raw_np),
                                 jnp.asarray(lw_raw_np), jnp.asarray(bl0),
                                 max_shift_hz, min_lw_hz, lw_range_hz)
    ref_masked = np.asarray(ref_full)[mask]

    np.testing.assert_allclose(np.asarray(masked_out), ref_masked, rtol=2e-2, atol=3e-2)
    print("KERNEL_OK")
</pallas_src>

<mosaic_0001>
module attributes {stable_mosaic.version = 11 : i64} {
  func.func @_lcm_kernel(%arg0: i32, %arg1: memref<8x256xf32, #tpu.memory_space<vmem>>, %arg2: memref<8x256xf32, #tpu.memory_space<vmem>>, %arg3: memref<1x256xf32, #tpu.memory_space<vmem>>, %arg4: memref<8x1xf32, #tpu.memory_space<vmem>>, %arg5: memref<8x1xf32, #tpu.memory_space<vmem>>, %arg6: memref<8x1xf32, #tpu.memory_space<vmem>>, %arg7: memref<1x16xf32, #tpu.memory_space<vmem>>, %arg8: memref<528x256xbf16, #tpu.memory_space<vmem>>, %arg9: memref<1x256xf32, #tpu.memory_space<vmem>>, %arg10: memref<1x528xbf16, #tpu.memory_space<vmem>>) attributes {dimension_semantics = [#tpu.dimension_semantics<arbitrary>], iteration_bounds = array<i64: 1>, scalar_prefetch = 0 : i64, scratch_operands = 1 : i64, tpu.core_type = #tpu.core_type<tc>, window_params = [{pipeline_mode = #tpu.pipeline_mode<synchronous>, transform_indices = @transform_0, window_bounds = array<i64: 8, 256>}, {pipeline_mode = #tpu.pipeline_mode<synchronous>, transform_indices = @transform_1, window_bounds = array<i64: 8, 256>}, {pipeline_mode = #tpu.pipeline_mode<synchronous>, transform_indices = @transform_2, window_bounds = array<i64: 1, 256>}, {pipeline_mode = #tpu.pipeline_mode<synchronous>, transform_indices = @transform_3, window_bounds = array<i64: 8, 1>}, {pipeline_mode = #tpu.pipeline_mode<synchronous>, transform_indices = @transform_4, window_bounds = array<i64: 8, 1>}, {pipeline_mode = #tpu.pipeline_mode<synchronous>, transform_indices = @transform_5, window_bounds = array<i64: 8, 1>}, {pipeline_mode = #tpu.pipeline_mode<synchronous>, transform_indices = @transform_6, window_bounds = array<i64: 1, 16>}, {transform_indices = @transform_7, window_bounds = array<i64: 528, 256>}, {transform_indices = @transform_8, window_bounds = array<i64: 1, 256>}]} {
    %c0_i32 = arith.constant 0 : i32
    %0 = arith.cmpi eq, %arg0, %c0_i32 : i32
    %1 = arith.extui %0 : i1 to i32
    %c0_i32_0 = arith.constant 0 : i32
    %2 = arith.cmpi ne, %1, %c0_i32_0 : i32
    scf.if %2 {
      %c0_6 = arith.constant 0 : index
      %c0_7 = arith.constant 0 : index
      %7 = vector.load %arg4[%c0_6, %c0_7] : memref<8x1xf32, #tpu.memory_space<vmem>>, vector<8x1xf32>
      %cst_8 = arith.constant 0.000000e+00 : f32
      %8 = vector.broadcast %cst_8 : f32 to vector<8x1xf32>
      %9 = arith.maximumf %7, %8 : vector<8x1xf32>
      %10 = math.absf %7 : vector<8x1xf32>
      %cst_9 = arith.constant 0.000000e+00 : f32
      %11 = vector.broadcast %cst_9 : f32 to vector<8x1xf32>
      %12 = arith.subf %11, %10 : vector<8x1xf32>
      %13 = math.exp %12 : vector<8x1xf32>
      %14 = math.log1p %13 : vector<8x1xf32>
      %15 = arith.addf %9, %14 : vector<8x1xf32>
      %c0_10 = arith.constant 0 : index
      %c0_11 = arith.constant 0 : index
      %16 = vector.load %arg5[%c0_10, %c0_11] : memref<8x1xf32, #tpu.memory_space<vmem>>, vector<8x1xf32>
      %17 = math.tanh %16 : vector<8x1xf32>
      %cst_12 = arith.constant 5.000000e+00 : f32
      %18 = vector.broadcast %cst_12 : f32 to vector<8x1xf32>
      %19 = arith.mulf %17, %18 : vector<8x1xf32>
      %c0_13 = arith.constant 0 : index
      %c0_14 = arith.constant 0 : index
      %20 = vector.load %arg6[%c0_13, %c0_14] : memref<8x1xf32, #tpu.memory_space<vmem>>, vector<8x1xf32>
      %cst_15 = arith.constant 0.000000e+00 : f32
      %21 = vector.broadcast %cst_15 : f32 to vector<8x1xf32>
      %22 = arith.subf %21, %20 : vector<8x1xf32>
      %23 = math.exp %22 : vector<8x1xf32>
      %cst_16 = arith.constant 1.000000e+00 : f32
      %24 = vector.broadcast %cst_16 : f32 to vector<8x1xf32>
      %25 = arith.addf %24, %23 : vector<8x1xf32>
      %cst_17 = arith.constant 9.89999961 : f32
      %26 = vector.broadcast %cst_17 : f32 to vector<8x1xf32>
      %27 = arith.divf %26, %25 : vector<8x1xf32>
      %cst_18 = arith.constant 1.000000e-01 : f32
      %28 = vector.broadcast %cst_18 : f32 to vector<8x1xf32>
      %29 = arith.addf %28, %27 : vector<8x1xf32>
      %c0_19 = arith.constant 0 : index
      %c0_20 = arith.constant 0 : index
      %30 = vector.load %arg3[%c0_19, %c0_20] : memref<1x256xf32, #tpu.memory_space<vmem>>, vector<1x256xf32>
      %cst_21 = arith.constant 0.000000e+00 : f32
      %cst_22 = arith.constant 3.14159274 : f32
      %31 = arith.subf %cst_21, %cst_22 : f32
      %32 = vector.broadcast %31 : f32 to vector<8x1xf32>
      %33 = arith.mulf %32, %29 : vector<8x1xf32>
      %34 = vector.broadcast %33 : vector<8x1xf32> to vector<8x256xf32>
      %35 = vector.broadcast %30 : vector<1x256xf32> to vector<8x256xf32>
      %36 = arith.mulf %34, %35 : vector<8x256xf32>
      %37 = math.exp %36 : vector<8x256xf32>
      %cst_23 = arith.constant 2.000000e+00 : f32
      %cst_24 = arith.constant 3.14159274 : f32
      %38 = arith.mulf %cst_23, %cst_24 : f32
      %39 = vector.broadcast %38 : f32 to vector<8x1xf32>
      %40 = arith.mulf %39, %19 : vector<8x1xf32>
      %41 = vector.broadcast %40 : vector<8x1xf32> to vector<8x256xf32>
      %42 = vector.broadcast %30 : vector<1x256xf32> to vector<8x256xf32>
      %43 = arith.mulf %41, %42 : vector<8x256xf32>
      %44 = math.cos %43 : vector<8x256xf32>
      %45 = math.sin %43 : vector<8x256xf32>
      %c0_25 = arith.constant 0 : index
      %c0_26 = arith.constant 0 : index
      %46 = vector.load %arg1[%c0_25, %c0_26] : memref<8x256xf32, #tpu.memory_space<vmem>>, vector<8x256xf32>
      %c0_27 = arith.constant 0 : index
      %c0_28 = arith.constant 0 : index
      %47 = vector.load %arg2[%c0_27, %c0_28] : memref<8x256xf32, #tpu.memory_space<vmem>>, vector<8x256xf32>
      %48 = vector.broadcast %15 : vector<8x1xf32> to vector<8x256xf32>
      %49 = arith.mulf %48, %37 : vector<8x256xf32>
      %50 = arith.mulf %46, %44 : vector<8x256xf32>
      %51 = arith.mulf %47, %45 : vector<8x256xf32>
      %52 = arith.subf %50, %51 : vector<8x256xf32>
      %53 = arith.mulf %49, %52 : vector<8x256xf32>
      %cst_29 = arith.constant dense<0.000000e+00> : vector<256xf32>
      %54 = vector.multi_reduction <add>, %53, %cst_29 [0] : vector<8x256xf32> to vector<256xf32>
      %55 = vector.shape_cast %54 : vector<256xf32> to vector<1x256xf32>
      %56 = arith.mulf %46, %45 : vector<8x256xf32>
      %57 = arith.mulf %47, %44 : vector<8x256xf32>
      %58 = arith.addf %56, %57 : vector<8x256xf32>
      %59 = arith.mulf %49, %58 : vector<8x256xf32>
      %cst_30 = arith.constant dense<0.000000e+00> : vector<256xf32>
      %60 = vector.multi_reduction <add>, %59, %cst_30 [0] : vector<8x256xf32> to vector<256xf32>
      %61 = vector.shape_cast %60 : vector<256xf32> to vector<1x256xf32>
      %62 = arith.truncf %55 : vector<1x256xf32> to vector<1x256xbf16>
      %c0_31 = arith.constant 0 : index
      %c0_32 = arith.constant 0 : index
      %63 = vector.load %arg10[%c0_31, %c0_32] : memref<1x528xbf16, #tpu.memory_space<vmem>>, vector<1x256xbf16>
      tpu.vector_store %arg10[%c0_31, %c0_32], %62 {strides = array<i32>} : memref<1x528xbf16, #tpu.memory_space<vmem>>, vector<1x256xbf16>,
      %64 = arith.truncf %61 : vector<1x256xf32> to vector<1x256xbf16>
      %c0_33 = arith.constant 0 : index
      %c256 = arith.constant 256 : index
      %65 = vector.load %arg10[%c0_33, %c256] : memref<1x528xbf16, #tpu.memory_space<vmem>>, vector<1x256xbf16>
      tpu.vector_store %arg10[%c0_33, %c256], %64 {strides = array<i32>} : memref<1x528xbf16, #tpu.memory_space<vmem>>, vector<1x256xbf16>,
      %c0_34 = arith.constant 0 : index
      %c0_35 = arith.constant 0 : index
      %66 = vector.load %arg7[%c0_34, %c0_35] : memref<1x16xf32, #tpu.memory_space<vmem>>, vector<1x16xf32>
      %67 = arith.truncf %66 : vector<1x16xf32> to vector<1x16xbf16>
      %c0_36 = arith.constant 0 : index
      %c512 = arith.constant 512 : index
      %68 = vector.load %arg10[%c0_36, %c512] : memref<1x528xbf16, #tpu.memory_space<vmem>>, vector<1x16xbf16>
      tpu.vector_store %arg10[%c0_36, %c512], %67 {strides = array<i32>} : memref<1x528xbf16, #tpu.memory_space<vmem>>, vector<1x16xbf16>,
    } else {
    }
    %c0 = arith.constant 0 : index
    %c0_1 = arith.constant 0 : index
    %3 = vector.load %arg10[%c0, %c0_1] : memref<1x528xbf16, #tpu.memory_space<vmem>>, vector<1x528xbf16>
    %c0_2 = arith.constant 0 : index
    %c0_3 = arith.constant 0 : index
    %4 = vector.load %arg8[%c0_2, %c0_3] : memref<528x256xbf16, #tpu.memory_space<vmem>>, vector<528x256xbf16>
    %cst = arith.constant dense<0.000000e+00> : vector<1x256xf32>
    %5 = tpu.matmul %3, %4, %cst {dimension_numbers = #tpu.dot_dimension_numbers<[1], [0], [0], [1], [0, 0, 1, 1], [], []>} : vector<1x528xbf16>, vector<528x256xbf16>, vector<1x256xf32> -> vector<1x256xf32>
    %c0_4 = arith.constant 0 : index
    %c0_5 = arith.constant 0 : index
    %6 = vector.load %arg9[%c0_4, %c0_5] : memref<1x256xf32, #tpu.memory_space<vmem>>, vector<1x256xf32>
    tpu.vector_store %arg9[%c0_4, %c0_5], %5 {strides = array<i32>} : memref<1x256xf32, #tpu.memory_space<vmem>>, vector<1x256xf32>,
    return
  }
  func.func @transform_0(%arg0: i32) -> (i32, i32) {
    %c0_i32 = arith.constant 0 : i32
    %c0_i32_0 = arith.constant 0 : i32
    %c0_i32_1 = arith.constant 0 : i32
    return %c0_i32, %c0_i32_0 : i32, i32
  }
  func.func @transform_1(%arg0: i32) -> (i32, i32) {
    %c0_i32 = arith.constant 0 : i32
    %c0_i32_0 = arith.constant 0 : i32
    %c0_i32_1 = arith.constant 0 : i32
    return %c0_i32, %c0_i32_0 : i32, i32
  }
  func.func @transform_2(%arg0: i32) -> (i32, i32) {
    %c0_i32 = arith.constant 0 : i32
    %c0_i32_0 = arith.constant 0 : i32
    %c0_i32_1 = arith.constant 0 : i32
    return %c0_i32, %c0_i32_0 : i32, i32
  }
  func.func @transform_3(%arg0: i32) -> (i32, i32) {
    %c0_i32 = arith.constant 0 : i32
    %c0_i32_0 = arith.constant 0 : i32
    %c0_i32_1 = arith.constant 0 : i32
    return %c0_i32, %c0_i32_0 : i32, i32
  }
  func.func @transform_4(%arg0: i32) -> (i32, i32) {
    %c0_i32 = arith.constant 0 : i32
    %c0_i32_0 = arith.constant 0 : i32
    %c0_i32_1 = arith.constant 0 : i32
    return %c0_i32, %c0_i32_0 : i32, i32
  }
  func.func @transform_5(%arg0: i32) -> (i32, i32) {
    %c0_i32 = arith.constant 0 : i32
    %c0_i32_0 = arith.constant 0 : i32
    %c0_i32_1 = arith.constant 0 : i32
    return %c0_i32, %c0_i32_0 : i32, i32
  }
  func.func @transform_6(%arg0: i32) -> (i32, i32) {
    %c0_i32 = arith.constant 0 : i32
    %c0_i32_0 = arith.constant 0 : i32
    %c0_i32_1 = arith.constant 0 : i32
    return %c0_i32, %c0_i32_0 : i32, i32
  }
  func.func @transform_7(%arg0: i32) -> (i32, i32) {
    %c0_i32 = arith.constant 0 : i32
    %c0_i32_0 = arith.constant 0 : i32
    return %c0_i32, %arg0 : i32, i32
  }
  func.func @transform_8(%arg0: i32) -> (i32, i32) {
    %c0_i32 = arith.constant 0 : i32
    %c0_i32_0 = arith.constant 0 : i32
    return %c0_i32, %arg0 : i32, i32
  }
}

</mosaic_0001>

<bundles_post_ra>
// kernel: tpu_custom_call.1
= control target key start
LH: loop header
LB: loop body
LE: loop exit
PB: predicated region body
PF: predicated region fallthrough
CT: control target
= control target key end

     0   :  { %13 = vsyncpa [#allocation4], 0  ;;  %s1765_s0 = inlined_call_operand.vmem [shape: f32[8,256], index: 0, kind: input, shape index: {}]   ;;  %s1766_s1 = inlined_call_operand.hbm [shape: f32[8,256], index: 1, kind: input, shape index: {}]   ;;  %s1767_s2 = inlined_call_operand.vmem [shape: f32[1,256], index: 2, kind: input, shape index: {}]   ;;  %s1768_s3 = inlined_call_operand.vmem [shape: f32[8,1], index: 3, kind: input, shape index: {}]   ;;  %s1769_s4 = inlined_call_operand.vmem [shape: f32[8,1], index: 4, kind: input, shape index: {}]   ;;  %s1770_s5 = inlined_call_operand.vmem [shape: f32[8,1], index: 5, kind: input, shape index: {}]   ;;  %s1771_s6 = inlined_call_operand.vmem [shape: f32[1,16], index: 6, kind: input, shape index: {}]   ;;  %s1772_s7 = inlined_call_operand.hbm [shape: bf16[528,256], index: 7, kind: input, shape index: {}]   ;;  %s1773_s8 = inlined_call_operand.hbm [shape: f32[1,256], index: 8, kind: output, shape index: {}]  }
   0x1   :  { %14 = vsyncpa [#allocation7], 0 }
   0x2   :  { %15 = vsyncpa [#allocation5], 0  ;;  %s1560_s27 = smov [#allocation3]   ;;  %s1561_s29 = smov [#allocation6]  }
   0x3   :  { %s24_s28 = sshll.u32 %s1560_s27, 4  ;;  %s43_s30 = sshll.u32 %s1561_s29, 4  ;;  %s25_s28 = int_to_ptr.vmem [resolvable:$true] %s24_s28  ;;  %s1618_s30 = int_to_ptr.vmem [resolvable:$true] %s43_s30 }
   0x4   :  { %s1488_s11 = scalar_lea.hbm %s1766_s1, 256 }
   0x5   :  { %p1489_p0 = scmp.ne.s32.totalorder %s1766_s1, %s1488_s11  ;;  %p1492_p1 = scmp.lt.u32.totalorder %s1488_s11, %s1766_s1 }
   0x7   :  { %p1494_p2 = pnand %p1492_p1, %p1489_p0 }
   0x9   :  { %1497 = shalt.err (!%p1494_p2)
}
   0xa   :  { %s1498_s16 = scalar_lea.vmem %s25_s28, 256  ;;  %p1503_p4 = scmp.lt.s32.totalorder %s25_s28, %s25_s28 }
   0xb   :  { %p1499_p3 = scmp.ne.s32.totalorder %s25_s28, %s1498_s16  ;;  %p1504_p5 = scmp.lt.s32.totalorder %s1498_s16, %s1498_s16 }
   0xd   :  { %p1505_p6 = por %p1504_p5, %p1503_p4 }
   0xf   :  { %p1506_p7 = pnand %p1505_p6, %p1499_p3 }
  0x11   :  { %1509 = shalt.err (!%p1506_p7)
}
  0x12   :  { %27 = dma.hbm_to_vmem [thread:$0]  %s1766_s1, 256, %s25_s28, [#allocation4]  }
  0x13   :  { %s1510_s21 = scalar_lea.hbm %s1772_s7, 8448 }
  0x14   :  { %p1511_p8 = scmp.ne.s32.totalorder %s1772_s7, %s1510_s21  ;;  %p1514_p9 = scmp.lt.u32.totalorder %s1510_s21, %s1772_s7 }
  0x16   :  { %p1516_p10 = pnand %p1514_p9, %p1511_p8 }
  0x18   :  { %1519 = shalt.err (!%p1516_p10)
}
  0x19   :  { %s1520_s26 = scalar_lea.vmem %s1618_s30, 8448  ;;  %p1525_p12 = scmp.lt.s32.totalorder %s1618_s30, %s1618_s30 }
  0x1a   :  { %p1521_p11 = scmp.ne.s32.totalorder %s1618_s30, %s1520_s26  ;;  %p1526_p13 = scmp.lt.s32.totalorder %s1520_s26, %s1520_s26 }
  0x1c   :  { %p1527_p0 = por %p1526_p13, %p1525_p12 }
  0x1e   :  { %p1528_p1 = pnand %p1527_p0, %p1521_p11 }
  0x20   :  { %1531 = shalt.err (!%p1528_p1)
}
  0x21   :  { %s1562_s1 = smov 128   ;;  %s1563_s27 = smov 8  }
  0x22   :  { %49 = dma.hbm_to_vmem [thread:$0]  %s1772_s7, 8448, %s1618_s30, [#allocation7], %s1562_s1, %s1562_s1, %s1563_s27  }
  0x23   :  { %1554 = dma.done.wait [#allocation4], 256  }
  0x24   :  { %1555 = vsyncadd [#allocation4], 4294967040 }
  0x25   :  { %1556 = dma.done.wait [#allocation7], 8448  }
  0x26   :  { %1557 = vsyncadd [#allocation7], 4294958848  ;;  %v1564_v0 = vmov 0   ;;  %v77_v1 = vld [vmem:[%s1769_s4] sm:$0xff]  ;;  %v1372_v33 = vld [vmem:[#allocation6 + $0x14] ss:$8 sps:$4 sm:$0xff]  }
  0x27   :  { %1364 = vset.pattern.permute.xlu0 %v1564_v0  ;;  %1365 = vset.pattern.permute.xlu1 %v1564_v0  ;;  %v80_v2 = vld [vmem:[%s1770_s5] sm:$0xff]  ;;  %1466 = vtanh.f32 %v77_v1  ;;  %v1375_v35 = vld [vmem:[#allocation6 + $0x114] ss:$8 sps:$4 sm:$0xff]   ;;  %vm606_vm1 = vsmask.f32 256  ;;  %vm640_vm2 = vcmask 122880  }
  0x28   :  { %v61_v3 = vld [vmem:[%s1768_s3] sm:$0xff]  ;;  %v81_v4 = vsub.f32 0.0, %v80_v2  ;;  %v1384_v41 = vld [vmem:[#allocation6 + $0x34] ss:$8 sps:$4 sm:$0xff]   ;;  %vm641_vm3 = vmand %vm640_vm2, %vm606_vm1 }
  0x29   :  { %v63_v5 = vand.u32 2147483647, %v61_v3  ;;  %v62_v23 = vmax.f32 %v61_v3, 0.0  ;;  %v1366_v29 = vld [vmem:[#allocation6 + $0x4] ss:$8 sps:$4 sm:$0xff]  }
  0x2a   :  { %v82_v6 = vmul.f32 1.442695, %v81_v4  ;;  %v1368_v30 = vld [vmem:[#allocation6] ss:$8 sps:$4 sm:$0xff]   ;;  %1090 = vmatprep.subr.bf16.mxu1 %v1366_v29  ;;  %v1369_v31 = vld [vmem:[#allocation6 + $0x104] ss:$8 sps:$4 sm:$0xff]  }
  0x2b   :  { %v64_v7 = vsub.f32 0.0, %v63_v5  ;;  %1091 = vmatpush1.bf16.msra.mxu1 %v1368_v30  ;;  %v1371_v32 = vld [vmem:[#allocation6 + $0x100] ss:$8 sps:$4 sm:$0xff]   ;;  %1131 = vmatprep.subr.bf16.mxu0 %v1369_v31  ;;  %v1374_v34 = vld [vmem:[#allocation6 + $0x10] ss:$8 sps:$4 sm:$0xff]  }
  0x2c   :  { %1468 = vpow2.f32 %v82_v6  ;;  %1132 = vmatpush1.bf16.msra.mxu0 %v1371_v32  ;;  %1092 = vmatprep.subr.bf16.mxu1 %v1372_v33  ;;  %v1377_v36 = vld [vmem:[#allocation6 + $0x110] ss:$8 sps:$4 sm:$0xff]   ;;  %v1378_v37 = vld [vmem:[#allocation6 + $0x24] ss:$8 sps:$4 sm:$0xff]   ;;  %v1380_v38 = vld [vmem:[#allocation6 + $0x20] ss:$8 sps:$4 sm:$0xff]  }
  0x2d   :  { %v65_v8 = vmul.f32 1.442695, %v64_v7  ;;  %1133 = vmatprep.subr.bf16.mxu0 %v1375_v35  ;;  %v1381_v39 = vld [vmem:[#allocation6 + $0x124] ss:$8 sps:$4 sm:$0xff]   ;;  %v1383_v40 = vld [vmem:[#allocation6 + $0x120] ss:$8 sps:$4 sm:$0xff]  }
  0x2e   :  { %v1386_v42 = vld [vmem:[#allocation6 + $0x30] ss:$8 sps:$4 sm:$0xff]   ;;  %v1387_v43 = vld [vmem:[#allocation6 + $0x134] ss:$8 sps:$4 sm:$0xff]   ;;  %v1390_v45 = vld [vmem:[#allocation6 + $0x44] ss:$8 sps:$4 sm:$0xff]  }
  0x2f   :  { %1470 = vpow2.f32 %v65_v8  ;;  %1093 = vmatpush1.bf16.msra.mxu1 %v1374_v34  ;;  %v1389_v44 = vld [vmem:[#allocation6 + $0x130] ss:$8 sps:$4 sm:$0xff]   ;;  %v1392_v46 = vld [vmem:[#allocation6 + $0x40] ss:$8 sps:$4 sm:$0xff]   ;;  %v1393_v47 = vld [vmem:[#allocation6 + $0x144] ss:$8 sps:$4 sm:$0xff]  }
  0x30   :  { %1134 = vmatpush1.bf16.msra.mxu0 %v1377_v36  ;;  %1094 = vmatprep.subr.bf16.mxu1 %v1378_v37  ;;  %v1395_v48 = vld [vmem:[#allocation6 + $0x140] ss:$8 sps:$4 sm:$0xff]   ;;  %v1396_v49 = vld [vmem:[#allocation6 + $0x54] ss:$8 sps:$4 sm:$0xff]   ;;  %v1398_v50 = vld [vmem:[#allocation6 + $0x50] ss:$8 sps:$4 sm:$0xff]  }
  0x31   :  { %v1467_v9 = vpop.eup %1466  ;;  %1135 = vmatprep.subr.bf16.mxu0 %v1381_v39  ;;  %v1399_v51 = vld [vmem:[#allocation6 + $0x154] ss:$8 sps:$4 sm:$0xff]   ;;  %v1401_v52 = vld [vmem:[#allocation6 + $0x150] ss:$8 sps:$4 sm:$0xff]   ;;  %v638_v53 = vld [vmem:[%s1771_s6] sm:$0x1] }
  0x32   :  { %v79_v10 = vmul.f32 5.0, %v1467_v9  ;;  %v642_v54 = vld [vmem:[#allocation2 + $0x4] sm:$0x1]  ;;  %v639_v55 = vpack.c.bf16 %v638_v53, %v638_v53  ;;  %v1404_v57 = vld [vmem:[#allocation6 + $0x60] ss:$8 sps:$4 sm:$0xff]  }
  0x33   :  { %1095 = vmatpush1.bf16.msra.mxu1 %v1380_v38  ;;  %v1402_v56 = vld [vmem:[#allocation6 + $0x64] ss:$8 sps:$4 sm:$0xff]   ;;  %v1407_v59 = vld [vmem:[#allocation6 + $0x160] ss:$8 sps:$4 sm:$0xff]   ;;  %v1408_v61 = vld [vmem:[#allocation6 + $0x74] ss:$8 sps:$4 sm:$0xff]  }
  0x34   :  { %v112_v11 = vmul.f32 6.2831855, %v79_v10  ;;  %1136 = vmatpush1.bf16.msra.mxu0 %v1383_v40  ;;  %1096 = vmatprep.subr.bf16.mxu1 %v1384_v41  ;;  %v1405_v58 = vld [vmem:[#allocation6 + $0x164] ss:$8 sps:$4 sm:$0xff]   ;;  %v643_v60 = vsel %vm641_vm3, %v639_v55, %v642_v54  ;;  %v1410_v62 = vld [vmem:[#allocation6 + $0x70] ss:$8 sps:$4 sm:$0xff]  }
  0x35   :  { %1137 = vmatprep.subr.bf16.mxu0 %v1387_v43  ;;  %644 = vst [vmem:[#allocation2 + $0x4] sm:$0x1] %v643_v60  ;;  %v1411_v63 = vld [vmem:[#allocation6 + $0x174] ss:$8 sps:$4 sm:$0xff]   ;;  %v1413_v1 = vld [vmem:[#allocation6 + $0x170] ss:$8 sps:$4 sm:$0xff]  }
  0x36   :  { %v1469_v12 = vpop.eup %1468  ;;  %115 = vperm.xlu0 %1364, %v112_v11   ;;  %v1414_v2 = vld [vmem:[#allocation6 + $0x84] ss:$8 sps:$4 sm:$0xff]   ;;  %v1416_v3 = vld [vmem:[#allocation6 + $0x80] ss:$8 sps:$4 sm:$0xff]   ;;  %v1420_v6 = vld [vmem:[#allocation6 + $0x94] ss:$8 sps:$4 sm:$0xff]   ;;  %v96_v11 = vlaneseq }
  0x37   :  { %v84_v13 = vadd.f32 1.0, %v1469_v12  ;;  %1097 = vmatpush1.bf16.msra.mxu1 %v1386_v42  ;;  %v1417_v4 = vld [vmem:[#allocation6 + $0x184] ss:$8 sps:$4 sm:$0xff]   ;;  %v1419_v5 = vld [vmem:[#allocation6 + $0x180] ss:$8 sps:$4 sm:$0xff]  }
  0x38   :  { %1138 = vmatpush1.bf16.msra.mxu0 %v1389_v44  ;;  %1098 = vmatprep.subr.bf16.mxu1 %v1390_v45  ;;  %v1422_v7 = vld [vmem:[#allocation6 + $0x90] ss:$8 sps:$4 sm:$0xff]   ;;  %v1423_v8 = vld [vmem:[#allocation6 + $0x194] ss:$8 sps:$4 sm:$0xff]   ;;  %v1426_v10 = vld [vmem:[#allocation6 + $0xa4] ss:$8 sps:$4 sm:$0xff]  }
  0x39   :  { %v1471_v14 = vpop.eup %1470  ;;  %1472 = vrcp.f32 %v84_v13  ;;  %1139 = vmatprep.subr.bf16.mxu0 %v1393_v47  ;;  %v1425_v9 = vld [vmem:[#allocation6 + $0x190] ss:$8 sps:$4 sm:$0xff]   ;;  %v1428_v12 = vld [vmem:[#allocation6 + $0xa0] ss:$8 sps:$4 sm:$0xff]   ;;  %v1429_v13 = vld [vmem:[#allocation6 + $0x1a4] ss:$8 sps:$4 sm:$0xff]  }
  0x3a   :  { %v67_v15 = vadd.f32 1.0, %v1471_v14  ;;  %v70_v16 = vmul.f32 -0.5, %v1471_v14  ;;  %v73_v18 = vand.u32 2147483647, %v1471_v14  ;;  %v1446_v31 = vld [vmem:[#allocation6 + $0xd0] ss:$8 sps:$4 sm:$0xff]  }
  0x3b   :  { %1099 = vmatpush1.bf16.msra.mxu1 %v1392_v46  ;;  %v1449_v32 = vld [vmem:[#allocation6 + $0x1d0] ss:$8 sps:$4 sm:$0xff]   ;;  %v1450_v33 = vld [vmem:[#allocation6 + $0xe4] ss:$8 sps:$4 sm:$0xff]   ;;  %v1452_v38 = vld [vmem:[#allocation6 + $0xe0] ss:$8 sps:$4 sm:$0xff]  }
  0x3c   :  { %1474 = vlog2.f32 %v67_v15  ;;  %v71_v17 = vadd.f32 1.0, %v70_v16  ;;  %vm74_vm0 = vcmp.lt.f32.partialorder %v73_v18, 0.0004427343  ;;  %1140 = vmatpush1.bf16.msra.mxu0 %v1395_v48  ;;  %1100 = vmatprep.subr.bf16.mxu1 %v1396_v49  ;;  %v1432_v15 = vld [vmem:[#allocation6 + $0xb4] ss:$8 sps:$4 sm:$0xff]   ;;  %v1665_v16 = vshrl.u32 %v96_v11, 7 }
  0x3d   :  { %1141 = vmatprep.subr.bf16.mxu0 %v1399_v51  ;;  %v1435_v18 = vld [vmem:[#allocation6 + $0x1b4] ss:$8 sps:$4 sm:$0xff]   ;;  %v1453_v35 = vld [vmem:[#allocation6 + $0x1e4] ss:$8 sps:$4 sm:$0xff]   ;;  %v1455_v39 = vld [vmem:[#allocation6 + $0x1e0] ss:$8 sps:$4 sm:$0xff]  }
  0x3e   :  { %v72_v21 = vmul.f32 %v1471_v14, %v71_v17  ;;  %v1431_v14 = vld [vmem:[#allocation6 + $0x1a0] ss:$8 sps:$4 sm:$0xff]   ;;  %v1434_v17 = vld [vmem:[#allocation6 + $0xb0] ss:$8 sps:$4 sm:$0xff]   ;;  %v1456_v42 = vld [vmem:[#allocation6 + $0xf4] ss:$8 sps:$4 sm:$0xff]  }
  0x3f   :  { %1101 = vmatpush1.bf16.msra.mxu1 %v1398_v50  ;;  %v1459_v44 = vld [vmem:[#allocation6 + $0x1f4] ss:$8 sps:$4 sm:$0xff]   ;;  %v1458_v46 = vld [vmem:[#allocation6 + $0xf0] ss:$8 sps:$4 sm:$0xff]   ;;  %v1465_v53 = vld [vmem:[#allocation6 + $0x204] ss:$8 sps:$4 sm:$0xff]  }
  0x40   :  { %1142 = vmatpush1.bf16.msra.mxu0 %v1401_v52  ;;  %1102 = vmatprep.subr.bf16.mxu1 %v1402_v56  ;;  %v1461_v51 = vld [vmem:[#allocation6 + $0x1f0] ss:$8 sps:$4 sm:$0xff]  }
  0x41   :  { %1143 = vmatprep.subr.bf16.mxu0 %v1405_v58 }
  0x43   :  { %v1473_v19 = vpop.eup %1472  ;;  %1103 = vmatpush1.bf16.msra.mxu1 %v1404_v57 }
  0x44   :  { %v86_v20 = vmul.f32 9.9, %v1473_v19  ;;  %1144 = vmatpush1.bf16.msra.mxu0 %v1407_v59  ;;  %1104 = vmatprep.subr.bf16.mxu1 %v1408_v61  ;;  %v1437_v19 = vld [vmem:[#allocation6 + $0x1b0] ss:$8 sps:$4 sm:$0xff]  }
  0x45   :  { %1145 = vmatprep.subr.bf16.mxu0 %v1411_v63 }
  0x46   :  { %v1475_v22 = vpop.eup %1474  ;;  %v87_v24 = vadd.f32 0.1, %v86_v20  ;;  %v1438_v20 = vld [vmem:[#allocation6 + $0xc4] ss:$8 sps:$4 sm:$0xff]  }
  0x47   :  { %v69_v25 = vmul.f32 0.6931472, %v1475_v22  ;;  %1105 = vmatpush1.bf16.msra.mxu1 %v1410_v62  ;;  %v98_v22 = vsub.s32 0, %v1665_v16 }
  0x48   :  { %v89_v26 = vmul.f32 -3.1415927, %v87_v24  ;;  %1146 = vmatpush1.bf16.msra.mxu0 %v1413_v1  ;;  %1106 = vmatprep.subr.bf16.mxu1 %v1414_v2  ;;  %v88_v24 = vld [vmem:[%s1767_s2] sm:$0x3]  ;;  %v1565_v2 = vmov 683565275  }
  0x49   :  { %v75_v27 = vsel %vm74_vm0, %v72_v21, %v69_v25  ;;  %1147 = vmatprep.subr.bf16.mxu0 %v1417_v4  ;;  %v1441_v21 = vld [vmem:[#allocation6 + $0x1c4] ss:$8 sps:$4 sm:$0xff]   ;;  %v1440_v25 = vld [vmem:[#allocation6 + $0xc0] ss:$8 sps:$4 sm:$0xff]   ;;  %v1672_v29 = vrot.slane %v88_v24, %v98_v22 }
  0x4a   :  { %v76_v28 = vadd.f32 %v75_v27, %v62_v23  ;;  %92 = vperm.xlu0 %1364, %v89_v26   ;;  %v102_v23 = vsub.s32 1, %v1665_v16  ;;  %v1443_v26 = vld [vmem:[#allocation6 + $0x1c0] ss:$8 sps:$4 sm:$0xff]   ;;  %v1444_v27 = vld [vmem:[#allocation6 + $0xd4] ss:$8 sps:$4 sm:$0xff]  }
  0x4b   :  { %1107 = vmatpush1.bf16.msra.mxu1 %v1416_v3 }
  0x4c   :  { %540 = vperm.xlu1 %1365, %v76_v28   ;;  %1148 = vmatpush1.bf16.msra.mxu0 %v1419_v5  ;;  %v1447_v28 = vld [vmem:[#allocation6 + $0x1d4] ss:$8 sps:$4 sm:$0xff]   ;;  %v1674_v30 = vrot.slane %v88_v24, %v102_v23 }
  0x4d   :  { %1108 = vmatprep.subr.bf16.mxu1 %v1420_v6  ;;  %1149 = vmatprep.subr.bf16.mxu0 %v1423_v8  ;;  %v1566_v6 = vmov 2475754826   ;;  %v1567_v8 = vmov 2131351028  }
  0x4f   :  { %1109 = vmatpush1.bf16.msra.mxu1 %v1422_v7 }
  0x50   :  { %1150 = vmatpush1.bf16.msra.mxu0 %v1425_v9  ;;  %1110 = vmatprep.subr.bf16.mxu1 %v1426_v10  ;;  %v1568_v10 = vmov 2102212464  }
  0x51   :  { %1151 = vmatprep.subr.bf16.mxu0 %v1429_v13  ;;  %v1569_v13 = vmov 920167782  }
  0x53   :  { %1111 = vmatpush1.bf16.msra.mxu1 %v1428_v12 }
  0x54   :  { %1152 = vmatpush1.bf16.msra.mxu0 %v1431_v14  ;;  %1112 = vmatprep.subr.bf16.mxu1 %v1432_v15 }
  0x55   :  { %1153 = vmatprep.subr.bf16.mxu0 %v1435_v18 }
  0x57   :  { %1113 = vmatpush1.bf16.msra.mxu1 %v1434_v17 }
  0x58   :  { %1154 = vmatpush1.bf16.msra.mxu0 %v1437_v19  ;;  %1114 = vmatprep.subr.bf16.mxu1 %v1438_v20 }
  0x59   :  { %1155 = vmatprep.subr.bf16.mxu0 %v1441_v21  ;;  %v1570_v21 = vmov 1326507024  }
  0x5b   :  { %1115 = vmatpush1.bf16.msra.mxu1 %v1440_v25 }
  0x5c   :  { %1156 = vmatpush1.bf16.msra.mxu0 %v1443_v26  ;;  %1116 = vmatprep.subr.bf16.mxu1 %v1444_v27 }
  0x5d   :  { %1157 = vmatprep.subr.bf16.mxu0 %v1447_v28 }
  0x5f   :  { %1117 = vmatpush1.bf16.msra.mxu1 %v1446_v31 }
  0x60   :  { %1158 = vmatpush1.bf16.msra.mxu0 %v1449_v32  ;;  %1118 = vmatprep.subr.bf16.mxu1 %v1450_v33 }
  0x61   :  { %1159 = vmatprep.subr.bf16.mxu0 %v1453_v35 }
  0x63   :  { %1119 = vmatpush1.bf16.msra.mxu1 %v1452_v38 }
  0x64   :  { %1160 = vmatpush1.bf16.msra.mxu0 %v1455_v39  ;;  %1120 = vmatprep.subr.bf16.mxu1 %v1456_v42 }
  0x65   :  { %1161 = vmatprep.subr.bf16.mxu0 %v1459_v44 }
  0x67   :  { %1121 = vmatpush1.bf16.msra.mxu1 %v1458_v46 }
  0x68   :  { %1162 = vmatpush1.bf16.msra.mxu0 %v1461_v51 }
  0x69   :  { %1172 = vmatprep.subr.bf16.mxu0 %v1465_v53 }
  0xb5   :  { %v116_v34 = vpop.permute.xlu0 %115 }
  0xb6   :  { %v1677_v36 = vmul.f32 %v116_v34, %v1672_v29  ;;  %v1680_v37 = vmul.f32 %v116_v34, %v1674_v30 }
  0xb8   :  { %v120_v40 = vand.u32 2147483647, %v1677_v36  ;;  %v123_v41 = vand.u32 2139095040, %v1677_v36  ;;  %v226_v43 = vand.u32 2139095040, %v1680_v37  ;;  %v223_v48 = vand.u32 2147483647, %v1680_v37 }
  0xb9   :  { %vm122_vm3 = vcmp.lt.s32.totalorder %v1677_v36, 0 }
  0xba   :  { %v124_v45 = vshrl.u32 %v123_v41, 23  ;;  %v127_v47 = vand.u32 8388607, %v120_v40  ;;  %v227_v49 = vshrl.u32 %v226_v43, 23  ;;  %v1690_v56 = vand.u32 8388607, %v223_v48 }
  0xbc   :  { %v1252_v50 = vadd.s32 4294967169, %v124_v45  ;;  %v1256_v52 = vadd.s32 4294967169, %v227_v49  ;;  %v128_v55 = vor.u32 8388608, %v127_v47  ;;  %v231_v63 = vor.u32 8388608, %v1690_v56 }
  0xbe   :  { %v130_v54 = vadd.s32 1, %v1252_v50  ;;  %v233_v57 = vadd.s32 1, %v1256_v52  ;;  %v1692_v62 = vshll.u32 %v128_v55, 8 }
  0xc0   :  { %vm131_vm4 = vcmp.gt.s32.totalorder %v130_v54, 0  ;;  %vm234_vm5 = vcmp.gt.s32.totalorder %v233_v57, 0 }
  0xc1   :  { %v132_v58 = vsel %vm131_vm4, %v130_v54, 0  ;;  %v235_v61 = vsel %vm234_vm5, %v233_v57, 0  ;;  %vm121_vm4 = vcmp.le.f32.partialorder %v120_v40, 0.7853982  ;;  %vm225_vm5 = vcmp.lt.s32.totalorder %v1680_v37, 0 }
  0xc2   :  { %v133_v59 = vshrl.u32 %v132_v58, 5  ;;  %v134_v60 = vand.u32 31, %v132_v58  ;;  %v1695_v4 = vshrl.u32 %v235_v61, 5  ;;  %v237_v5 = vand.u32 31, %v235_v61 }
  0xc4   :  { %v135_v1 = vsub.s32 32, %v134_v60  ;;  %v137_v3 = vshll.u32 %v1565_v2, %v134_v60  ;;  %v140_v7 = vshll.u32 %v1566_v6, %v134_v60  ;;  %v143_v9 = vshll.u32 %v1567_v8, %v134_v60 }
  0xc5   :  { %v146_v12 = vshll.u32 %v1568_v10, %v134_v60  ;;  %v149_v14 = vshll.u32 %v1569_v13, %v134_v60  ;;  %vm152_vm6 = vcmp.lt.s32.totalorder %v133_v59, 1  ;;  %vm153_vm7 = vcmp.lt.s32.totalorder %v133_v59, 2 }
  0xc6   :  { %v138_v15 = vshrl.u32 %v1566_v6, %v135_v1  ;;  %v141_v17 = vshrl.u32 %v1567_v8, %v135_v1  ;;  %v144_v18 = vshrl.u32 %v1568_v10, %v135_v1  ;;  %v136_v19 = vshrl.u32 %v1565_v2, %v135_v1 }
  0xc7   :  { %v147_v20 = vshrl.u32 %v1569_v13, %v135_v1  ;;  %v150_v22 = vshrl.u32 %v1570_v21, %v135_v1  ;;  %v238_v26 = vsub.s32 32, %v237_v5  ;;  %vm154_vm8 = vcmp.lt.s32.totalorder %v133_v59, 3 }
  0xc8   :  { %v139_v23 = vor.u32 %v138_v15, %v137_v3  ;;  %v142_v24 = vor.u32 %v141_v17, %v140_v7  ;;  %v145_v25 = vor.u32 %v144_v18, %v143_v9  ;;  %vm155_vm9 = vcmp.lt.s32.totalorder %v133_v59, 4 }
  0xc9   :  { %v148_v27 = vor.u32 %v147_v20, %v146_v12  ;;  %v151_v28 = vor.u32 %v150_v22, %v149_v14  ;;  %v240_v41 = vshll.u32 %v1565_v2, %v237_v5  ;;  %v241_v44 = vshrl.u32 %v1566_v6, %v238_v26 }
  0xca   :  { %v156_v31 = vsel %vm152_vm6, %v136_v19, %v139_v23  ;;  %v157_v32 = vsel %vm155_vm9, %v145_v25, 2102212464  ;;  %v160_v33 = vsel %vm152_vm6, %v139_v23, %v142_v24  ;;  %v164_v34 = vsel %vm152_vm6, %v142_v24, %v145_v25 }
  0xcb   :  { %v158_v35 = vsel %vm154_vm8, %v142_v24, %v157_v32  ;;  %v161_v38 = vsel %vm155_vm9, %v148_v27, 920167782  ;;  %v165_v39 = vsel %vm155_vm9, %v151_v28, 1326507024  ;;  %v243_v45 = vshll.u32 %v1566_v6, %v237_v5 }
  0xcc   :  { %v162_v42 = vsel %vm154_vm8, %v145_v25, %v161_v38  ;;  %v166_v43 = vsel %vm154_vm8, %v148_v27, %v165_v39  ;;  %v159_v46 = vsel %vm153_vm7, %v156_v31, %v158_v35  ;;  %v244_v50 = vshrl.u32 %v1567_v8, %v238_v26 }
  0xcd   :  { %v163_v47 = vsel %vm153_vm7, %v160_v33, %v162_v42  ;;  %v167_v49 = vsel %vm153_vm7, %v164_v34, %v166_v43  ;;  %v242_v55 = vor.u32 %v241_v44, %v240_v41  ;;  %v246_v57 = vshll.u32 %v1567_v8, %v237_v5 }
  0xce   :  { %v1704_v51 = vmul.u32.u64.low %v1692_v62, %v167_v49  ;;  %v1705_v52 = vmul.u32.u64.high %v1692_v62, %v167_v49, %v1704_v51  ;;  %v1708_v53 = vmul.u32.u64.low %v1692_v62, %v163_v47  ;;  %v1709_v54 = vmul.u32.u64.high %v1692_v62, %v163_v47, %v1708_v53 }
  0xcf   :  { %v245_v56 = vor.u32 %v244_v50, %v243_v45  ;;  %v247_v58 = vshrl.u32 %v1568_v10, %v238_v26  ;;  %v249_v60 = vshll.u32 %v1568_v10, %v237_v5  ;;  %v250_v61 = vshrl.u32 %v1569_v13, %v238_v26 }
  0xd0   :  { %v253_v1 = vshrl.u32 %v1570_v21, %v238_v26  ;;  %v271_v3 = vshll.u32 %v231_v63, 8  ;;  %v175_v59 = vmul.u32 %v1692_v62, %v159_v46  ;;  %v239_v6 = vshrl.u32 %v1565_v2, %v238_v26 }
  0xd1   :  { %v248_v7 = vor.u32 %v247_v58, %v246_v57  ;;  %v252_v9 = vshll.u32 %v1569_v13, %v237_v5  ;;  %vm177_vm10 = vc.u32 %v1705_v52, %v1708_v53  ;;  %v178_v12 = vadd.s32 1, %v1709_v54 }
  0xd2   :  { %v251_v14 = vor.u32 %v250_v61, %v249_v60  ;;  %vm255_vm11 = vcmp.lt.s32.totalorder %v1695_v4, 1  ;;  %vm257_vm12 = vcmp.lt.s32.totalorder %v1695_v4, 3  ;;  %vm258_vm13 = vcmp.lt.s32.totalorder %v1695_v4, 4 }
  0xd3   :  { %v254_v15 = vor.u32 %v253_v1, %v252_v9  ;;  %v263_v8 = vsel %vm255_vm11, %v242_v55, %v245_v56  ;;  %v179_v63 = vsel %vm177_vm10, %v178_v12, %v1709_v54  ;;  %v260_v10 = vsel %vm258_vm13, %v248_v7, 2102212464 }
  0xd4   :  { %v264_v62 = vsel %vm258_vm13, %v251_v14, 920167782  ;;  %v267_v2 = vsel %vm255_vm11, %v245_v56, %v248_v7  ;;  %v180_v17 = vadd.s32 %v179_v63, %v175_v59  ;;  %vm256_vm14 = vcmp.lt.s32.totalorder %v1695_v4, 2 }
  0xd5   :  { %v265_v5 = vsel %vm257_vm12, %v248_v7, %v264_v62  ;;  %v268_v13 = vsel %vm258_vm13, %v254_v15, 1326507024  ;;  %v259_v18 = vsel %vm255_vm11, %v239_v6, %v242_v55  ;;  %v261_v19 = vsel %vm257_vm12, %v245_v56, %v260_v10 }
  0xd6   :  { %v266_v20 = vsel %vm256_vm14, %v263_v8, %v265_v5  ;;  %v269_v21 = vsel %vm257_vm12, %v251_v14, %v268_v13  ;;  %v181_v22 = vadd.s32 536870912, %v180_v17  ;;  %v262_v31 = vsel %vm256_vm14, %v259_v18, %v261_v19 }
  0xd7   :  { %v270_v23 = vsel %vm256_vm14, %v267_v2, %v269_v21  ;;  %v1719_v24 = vmul.u32.u64.low %v271_v3, %v266_v20  ;;  %v1720_v25 = vmul.u32.u64.high %v271_v3, %v266_v20, %v1719_v24  ;;  %v278_v4 = vmul.u32 %v271_v3, %v262_v31  ;;  %v93_v2 = vpop.permute.xlu0 %92 }
  0xd8   :  { %v1722_v26 = vmul.u32.u64.low %v271_v3, %v270_v23  ;;  %v1723_v27 = vmul.u32.u64.high %v271_v3, %v270_v23, %v1722_v26  ;;  %v182_v28 = vshrl.u32 %v181_v22, 30  ;;  %v176_v51 = vadd.s32 %v1708_v53, %v1705_v52 }
  0xd9   :  { %v281_v33 = vadd.s32 1, %v1720_v25  ;;  %v106_v20 = vmul.f32 %v1672_v29, %v93_v2  ;;  %vm224_vm6 = vcmp.le.f32.partialorder %v223_v48, 0.7853982  ;;  %vm212_vm13 = vweird.f32 %v1677_v36 }
  0xda   :  { %v183_v32 = vshll.u32 %v182_v28, 30  ;;  %vm280_vm15 = vc.u32 %v1723_v27, %v1719_v24  ;;  %v279_v14 = vadd.s32 %v1719_v24, %v1723_v27  ;;  %v206_v53 = vsub.s32 4, %v182_v28 }
  0xdb   :  { %v282_v35 = vsel %vm280_vm15, %v281_v33, %v1720_v25  ;;  %v108_v27 = vmul.f32 1.442695, %v106_v20 }
  0xdc   :  { %v184_v34 = vsub.s32 %v180_v17, %v183_v32  ;;  %v283_v38 = vadd.s32 %v282_v35, %v278_v4  ;;  %v207_v19 = vsel %vm122_vm3, %v206_v53, %v182_v28  ;;  %v107_v32 = vmul.f32 %v1674_v30, %v93_v2 }
  0xdd   :  { %v209_v25 = vsel %vm121_vm4, 0, %v207_v19 }
  0xde   :  { %v186_v39 = vsub.s32 0, %v184_v34  ;;  %v284_v41 = vadd.s32 536870912, %v283_v38  ;;  %v419_v33 = vadd.s32 3, %v209_v25  ;;  %v110_v4 = vmul.f32 1.442695, %v107_v32 }
  0xdf   :  { %v213_v35 = vand.u32 3, %v209_v25 }
  0xe0   :  { %v1253_v42 = vmin.u32 %v186_v39, %v184_v34  ;;  %v285_v43 = vshrl.u32 %v284_v41, 30 }
  0xe1   :  { %vm218_vm7 = vcmp.eq.s32.totalorder %v213_v35, 2  ;;  %vm215_vm9 = vcmp.eq.s32.totalorder %v213_v35, 0  ;;  %vm214_vm11 = vcmp.lt.s32.totalorder %v213_v35, 2 }
  0xe2   :  { %v188_v44 = vclz %v1253_v42  ;;  %v286_v45 = vshll.u32 %v285_v43, 30  ;;  %v309_v26 = vsub.s32 4, %v285_v43 }
  0xe4   :  { %v1254_v46 = vadd.s32 4294967294, %v188_v44  ;;  %v287_v47 = vsub.s32 %v283_v38, %v286_v45  ;;  %v310_v28 = vsel %vm225_vm5, %v309_v26, %v285_v43  ;;  %v420_v38 = vand.u32 3, %v419_v33 }
  0xe5   :  { %v312_v39 = vsel %vm224_vm6, 0, %v310_v28 }
  0xe6   :  { %vm1255_vm0 = vcmp.lt.s32.totalorder %v1254_v46, 0  ;;  %v289_v50 = vsub.s32 0, %v287_v47  ;;  %vm425_vm8 = vcmp.eq.s32.totalorder %v420_v38, 2  ;;  %v523_v43 = vadd.s32 3, %v312_v39 }
  0xe7   :  { %v191_v49 = vsel %vm1255_vm0, 0, %v1254_v46  ;;  %vm422_vm10 = vcmp.eq.s32.totalorder %v420_v38, 0  ;;  %vm421_vm12 = vcmp.lt.s32.totalorder %v420_v38, 2 }
  0xe8   :  { %v192_v54 = vsub.s32 32, %v191_v49  ;;  %v196_v55 = vsub.s32 4294967266, %v191_v49  ;;  %v1257_v56 = vmin.u32 %v289_v50, %v287_v47  ;;  %v193_v57 = vshll.u32 %v184_v34, %v191_v49  ;;  %v534_v49 = vld [vmem:[%s1765_s0] sm:$0xff] }
  0xe9   :  { %v536_v50 = vld [vmem:[#allocation3] sm:$0xff] }
  0xea   :  { %v194_v58 = vshrl.u32 %v176_v51, %v192_v54  ;;  %v197_v60 = vadd.s32 127, %v196_v55  ;;  %v291_v61 = vclz %v1257_v56 }
  0xec   :  { %v195_v1 = vor.u32 %v194_v58, %v193_v57  ;;  %v198_v3 = vshll.u32 %v197_v60, 23  ;;  %v1258_v59 = vadd.s32 4294967294, %v291_v61  ;;  %v316_v57 = vand.u32 3, %v312_v39  ;;  %v541_v61 = vpop.permute.xlu1 %540 }
  0xed   :  { %v524_v60 = vand.u32 3, %v523_v43 }
  0xee   :  { %v199_v6 = vor.u32 4788187, %v198_v3  ;;  %vm1259_vm2 = vcmp.lt.s32.totalorder %v1258_v59, 0  ;;  %v202_v9 = vcvt.s32.f32 %v195_v1  ;;  %vm317_vm14 = vcmp.lt.s32.totalorder %v316_v57, 2 }
  0xef   :  { %v294_v12 = vsel %vm1259_vm2, 0, %v1258_v59  ;;  %vm318_vm15 = vcmp.eq.s32.totalorder %v316_v57, 0  ;;  %vm321_vm0 = vcmp.eq.s32.totalorder %v316_v57, 2  ;;  %vm529_vm2 = vcmp.eq.s32.totalorder %v524_v60, 2 }
  0xf0   :  { %v200_v7 = vand.u32 2147483647, %v199_v6  ;;  %v295_v15 = vsub.s32 32, %v294_v12  ;;  %v299_v8 = vsub.s32 4294967266, %v294_v12  ;;  %v296_v63 = vshll.u32 %v287_v47, %v294_v12 }
  0xf2   :  { %v203_v52 = vmul.f32 %v202_v9, %v200_v7  ;;  %v297_v10 = vshrl.u32 %v279_v14, %v295_v15  ;;  %v300_v62 = vadd.s32 127, %v299_v8 }
  0xf4   :  { %v204_v17 = vxor.u32 2147483648, %v203_v52  ;;  %v298_v5 = vor.u32 %v297_v10, %v296_v63  ;;  %v301_v13 = vshll.u32 %v300_v62, 23 }
  0xf6   :  { %v205_v18 = vsel %vm122_vm3, %v204_v17, %v203_v52  ;;  %v302_v22 = vor.u32 4788187, %v301_v13  ;;  %v305_v24 = vcvt.s32.f32 %v298_v5  ;;  %vm525_vm3 = vcmp.lt.s32.totalorder %v524_v60, 2  ;;  %v535_v5 = vld [vmem:[%s1765_s0 + $0x8] sm:$0xff]  ;;  %s1572_s0 = smov [#allocation8]  }
  0xf7   :  { %v208_v21 = vsel %vm121_vm4, %v1677_v36, %v205_v18  ;;  %vm526_vm4 = vcmp.eq.s32.totalorder %v524_v60, 0  ;;  %v537_v13 = vld [vmem:[#allocation3 + $0x8] sm:$0xff]  ;;  %s1242_s16 = sshll.u32 %s1572_s0, 4  ;;  %s1243_s16 = int_to_ptr.vmem [resolvable:$true] %s1242_s16 }
  0xf8   :  { %1476 = vcosq.f32 %v208_v21  ;;  %v303_v23 = vand.u32 2147483647, %v302_v22  ;;  %s1532_s17 = scalar_lea.vmem %s1243_s16, 32  ;;  %p1537_p3 = scmp.lt.s32.totalorder %s1243_s16, %s1243_s16 }
  0xf9   :  { %1478 = vsinq.f32 %v208_v21  ;;  %p1533_p2 = scmp.ne.s32.totalorder %s1243_s16, %s1532_s17  ;;  %p1538_p4 = scmp.lt.s32.totalorder %s1532_s17, %s1532_s17 }
  0xfa   :  { %v306_v31 = vmul.f32 %v305_v24, %v303_v23  ;;  %1480 = vpow2.f32 %v108_v27 }
  0xfb   :  { %p1539_p5 = por %p1538_p4, %p1537_p3 }
  0xfc   :  { %v307_v40 = vxor.u32 2147483648, %v306_v31 }
  0xfd   :  { %p1540_p6 = pnand %p1539_p5, %p1533_p2 }
  0xfe   :  { %v308_v29 = vsel %vm225_vm5, %v307_v40, %v306_v31  ;;  %vm315_vm5 = vweird.f32 %v1680_v37 }
  0xff   :  { %v311_v34 = vsel %vm224_vm6, %v1680_v37, %v308_v29  ;;  %vm605_vm6 = vcmask 1040384  }
 0x100   :  { %1482 = vcosq.f32 %v311_v34 }
 0x101   :  { %1484 = vsinq.f32 %v311_v34 }
 0x102   :  { %v1477_v41 = vpop.eup %1476  ;;  %1486 = vpow2.f32 %v110_v4 }
 0x103   :  { %v1479_v30 = vpop.eup %1478  ;;  %v219_v42 = vxor.u32 2147483648, %v1477_v41 }
 0x104   :  { %v216_v44 = vxor.u32 2147483648, %v1479_v30  ;;  %v1481_v55 = vpop.eup %1480 }
 0x105   :  { %v220_v45 = vsel %vm218_vm7, %v219_v42, %v1479_v30  ;;  %v427_v48 = vsel %vm425_vm8, %v219_v42, %v1479_v30  ;;  %v543_v14 = vmul.f32 %v1481_v55, %v541_v61  ;;  %v1571_v30 = vmov 1966171168  }
 0x106   :  { %v217_v46 = vsel %vm215_vm9, %v1477_v41, %v216_v44  ;;  %v424_v47 = vsel %vm422_vm10, %v1477_v41, %v216_v44  ;;  %v591_v42 = vunpack.c.l.s4 %v1571_v30  ;;  %vm608_vm7 = vcmask 1041409   ;;  %vm607_vm9 = vmand %vm605_vm6, %vm606_vm1 }
 0x107   :  { %v221_v51 = vsel %vm214_vm11, %v217_v46, %v220_v45  ;;  %v428_v54 = vsel %vm421_vm12, %v424_v47, %v427_v48  ;;  %vm609_vm8 = vsmask.f32 1280  ;;  %vm1086_vm1 = vcmask 130048  }
 0x108   :  { %v222_v56 = vsel %vm212_vm13, nan, %v221_v51  ;;  %v429_v58 = vsel %vm212_vm13, nan, %v428_v54  ;;  %vm610_vm10 = vmand %vm608_vm7, %vm609_vm8  ;;  %vm1233_vm12 = vcmp.lt.s32.totalorder %v96_v11, 256 }
 0x109   :  { %v545_v1 = vmul.f32 %v534_v49, %v222_v56  ;;  %v547_v3 = vmul.f32 %v536_v50, %v429_v58  ;;  %v565_v59 = vmul.f32 %v534_v49, %v429_v58  ;;  %v567_v6 = vmul.f32 %v536_v50, %v222_v56  ;;  %vm611_vm11 = vmor %vm610_vm10, %vm607_vm9 }
 0x10a   :  { %v1483_v7 = vpop.eup %1482  ;;  %v592_v49 = vunpack.c.0.s8 %v591_v42 }
 0x10b   :  { %v549_v9 = vsub.f32 %v545_v1, %v547_v3  ;;  %v569_v12 = vadd.f32 %v567_v6, %v565_v59  ;;  %v1485_v15 = vpop.eup %1484  ;;  %v322_v36 = vxor.u32 2147483648, %v1483_v7 }
 0x10c   :  { %v1487_v8 = vpop.eup %1486  ;;  %v319_v52 = vxor.u32 2147483648, %v1485_v15  ;;  %v595_v58 = vsub.s32 %v592_v49, %v1665_v16 }
 0x10d   :  { %v551_v53 = vmul.f32 %v549_v9, %v543_v14  ;;  %v571_v63 = vmul.f32 %v569_v12, %v543_v14  ;;  %v323_v10 = vsel %vm321_vm0, %v322_v36, %v1485_v15  ;;  %v531_v62 = vsel %vm529_vm2, %v322_v36, %v1485_v15  ;;  %v635_v9 = vld [vmem:[#allocation2 + $0x2] sm:$0x3] }
 0x10e   :  { %v320_v2 = vsel %vm318_vm15, %v1483_v7, %v319_v52  ;;  %v528_v17 = vsel %vm526_vm4, %v1483_v7, %v319_v52  ;;  %v544_v33 = vmul.f32 %v1487_v8, %v541_v61  ;;  %v612_v7 = vld [vmem:[#allocation2] sm:$0x3] }
 0x10f   :  { %v553_v18 = vrot.slane %v551_v53, 4  ;;  %v573_v19 = vrot.slane %v571_v63, 4  ;;  %v324_v20 = vsel %vm317_vm14, %v320_v2, %v323_v10  ;;  %v532_v21 = vsel %vm525_vm3, %v528_v17, %v531_v62  ;;  %v1463_v62 = vld [vmem:[#allocation6 + $0x200] ss:$8 sps:$4 sm:$0xff]  }
 0x110   :  { %v325_v22 = vsel %vm315_vm5, nan, %v324_v20  ;;  %v533_v23 = vsel %vm315_vm5, nan, %v532_v21 }
 0x111   :  { %v554_v24 = vadd.f32 %v553_v18, %v551_v53  ;;  %v574_v25 = vadd.f32 %v573_v19, %v571_v63  ;;  %v546_v26 = vmul.f32 %v535_v5, %v325_v22  ;;  %v548_v27 = vmul.f32 %v537_v13, %v533_v23 }
 0x112   :  { %v566_v31 = vmul.f32 %v535_v5, %v533_v23  ;;  %v568_v32 = vmul.f32 %v537_v13, %v325_v22 }
 0x113   :  { %v550_v40 = vsub.f32 %v546_v26, %v548_v27  ;;  %v555_v29 = vrot.slane %v554_v24, 2  ;;  %v575_v4 = vrot.slane %v574_v25, 2 }
 0x114   :  { %v570_v28 = vadd.f32 %v568_v32, %v566_v31 }
 0x115   :  { %v552_v34 = vmul.f32 %v550_v40, %v544_v33  ;;  %v556_v38 = vadd.f32 %v555_v29, %v554_v24  ;;  %v576_v39 = vadd.f32 %v575_v4, %v574_v25 }
 0x116   :  { %v572_v35 = vmul.f32 %v570_v28, %v544_v33 }
 0x117   :  { %v559_v37 = vrot.slane %v552_v34, 4  ;;  %v557_v45 = vrot.slane %v556_v38, 1  ;;  %v577_v46 = vrot.slane %v576_v39, 1 }
 0x118   :  { %v579_v41 = vrot.slane %v572_v35, 4 }
 0x119   :  { %v560_v44 = vadd.f32 %v559_v37, %v552_v34  ;;  %v558_v54 = vadd.f32 %v557_v45, %v556_v38  ;;  %v578_v56 = vadd.f32 %v577_v46, %v576_v39 }
 0x11a   :  { %v580_v43 = vadd.f32 %v579_v41, %v572_v35 }
 0x11b   :  { %v561_v48 = vrot.slane %v560_v44, 2 }
 0x11c   :  { %v581_v47 = vrot.slane %v580_v43, 2 }
 0x11d   :  { %v562_v50 = vadd.f32 %v561_v48, %v560_v44 }
 0x11e   :  { %v582_v51 = vadd.f32 %v581_v47, %v580_v43 }
 0x11f   :  { %v563_v55 = vrot.slane %v562_v50, 1 }
 0x120   :  { %v583_v57 = vrot.slane %v582_v51, 1 }
 0x121   :  { %v564_v60 = vadd.f32 %v563_v55, %v562_v50 }
 0x122   :  { %v584_v61 = vadd.f32 %v583_v57, %v582_v51 }
 0x123   :  { %v1268_v1 = vpack.c.bf16 %v564_v60, %v558_v54 }
 0x124   :  { %v1269_v3 = vpack.c.bf16 %v584_v61, %v578_v56 }
 0x125   :  { %v596_v59 = vrot.slane %v1268_v1, %v595_v58 }
 0x126   :  { %v626_v6 = vrot.slane %v1269_v3, %v595_v58 }
 0x127   :  { %v603_v12 = vrot.slane %v596_v59, %v595_v58 }
 0x128   :  { %v633_v14 = vrot.slane %v626_v6, %v595_v58 }
 0x129   :  { %v613_v15 = vsel %vm611_vm11, %v603_v12, %v612_v7 }
 0x12a   :  { %v636_v36 = vsel %vm611_vm11, %v633_v14, %v635_v9  ;;  %614 = vst [vmem:[#allocation2] sm:$0x3] %v613_v15 }
 0x12b   :  { %637 = vst [vmem:[#allocation2 + $0x2] sm:$0x3] %v636_v36 }
 0x132   :  { %v645_v8 = vld [vmem:[#allocation2] sm:$0x1f] }
 0x133   :  { %v720_v16 = vrot.slane %v645_v8, %v595_v58  ;;  %v713_v17 = vcombine.high %v645_v8, %v645_v8 }
 0x135   :  { %v728_v52 = vcombine.high %v720_v16, %v720_v16  ;;  %v735_v53 = vrot.slane %v720_v16, %v595_v58  ;;  %v727_v5 = vrot.slane %v713_v17, %v595_v58 }
 0x137   :  { %v749_v63 = vrot.slane %v728_v52, %v595_v58  ;;  %v750_v2 = vcombine.high %v735_v53, %v735_v53  ;;  %v742_v13 = vrot.slane %v727_v5, %v595_v58 }
 0x139   :  { %1122 = vmatprep.mubr.bf16.mxu1 %v749_v63  ;;  %v751_v10 = vcombine.high %v749_v63, %v749_v63 }
 0x13a   :  { %1123 = vmatmul.mubr.bf16.vlgmr.msra.gmra.mrb[0].mxu1 %v735_v53 }
 0x13b   :  { %1163 = vmatprep.mubr.bf16.mxu0 %v751_v10 }
 0x13c   :  { %1164 = vmatmul.mubr.bf16.vlgmr.msra.gmra.mrb[0].mxu0 %v750_v2 }
 0x13d   :  { %1173 = vmatpush1.bf16.msra.mxu0 %v1463_v62  ;;  %1204 = vmatprep.mubr.bf16.mxu0 %v1564_v0 }
 0x148   :  { %1336 = vmatmul.mubr.msk.bf16.vlgmr.msra.gmra.mrb[0].mxu0 %vm1086_vm1, %v742_v13 }
 0x20d   :  { %v1124_v18 = vpop.f32.mrb[0].mxu1 }
 0x20e   :  { %v1126_v19 = vpop.f32.mrb[1].mxu1 }
 0x20f   :  { %v1128_v20 = vpop.f32.mrb[2].mxu1 }
 0x210   :  { %v1129_v21 = vpop.f32.mrb[3].mxu1 }
 0x21b   :  { %v1206_v22 = vpop.f32.mrb[0].mxu0 }
 0x21c   :  { %v1337_v23 = vadd.f32 %v1206_v22, %v1124_v18  ;;  %v1208_v24 = vpop.f32.mrb[1].mxu0 }
 0x21d   :  { %v1338_v25 = vadd.f32 %v1208_v24, %v1126_v19  ;;  %v1210_v26 = vpop.f32.mrb[2].mxu0 }
 0x21e   :  { %v1211_v27 = vpop.f32.mrb[3].mxu0 }
 0x21f   :  { %v1215_v31 = vcombine.low %v1337_v23, %v1338_v25 }
 0x221   :  { %v1222_v32 = vrot.slane %v1215_v31, %v595_v58 }
 0x223   :  { %v1229_v0 = vrot.slane %v1222_v32, %v595_v58 }
 0x225   :  { %1235 = vst.msk [vmem:[#allocation8] sm:$0x3] %vm1233_vm12, %v1229_v0 }
 0x226   :  { %1543 = shalt.err (!%p1540_p6)
}
 0x227   :  { %s1544_s20 = scalar_lea.hbm %s1773_s8, 32 }
 0x228   :  { %p1545_p7 = scmp.ne.s32.totalorder %s1773_s8, %s1544_s20  ;;  %p1548_p8 = scmp.lt.u32.totalorder %s1544_s20, %s1773_s8 }
 0x22a   :  { %p1550_p9 = pnand %p1548_p8, %p1545_p7 }
 0x22c   :  { %1553 = shalt.err (!%p1550_p9)
}
 0x22d   :  { %1245 = dma.vmem_to_hbm [thread:$0]  %s1243_s16, 32, %s1773_s8, [#allocation5]  }
 0x22e   :  { %1558 = dma.done.wait [#allocation5], 32  }
 0x22f   :  { %1559 = vsyncadd [#allocation5], 4294967264 }
 0x230   :  { %1249 = vsyncpa [#allocation4], 1 }
 0x231   :  { %1250 = vsyncpa [#allocation7], 1 }
 0x232   :  { %1251 = vsyncpa [#allocation5], 1 }

</bundles_post_ra>
